<compile_context>
chip_gen: v6e
topology: v6e:2x2x1
jax: 0.10.0
libtpu: 0.0.40
codegen_flags: <defaults>
</compile_context>

<pallas_src>
import jax
import jax.numpy as jnp
from jax import lax
from jax.experimental import pallas as pl
from jax.experimental.pallas import tpu as pltpu


def resblock_kernel(x_ref, m1_ref, b1_ref, m2_ref, b2_ref, o_ref):
    # x_ref : (1, H, W*C)      lane-dense input slab (channels fastest within a row)
    # m*_ref: (3, W*C, W*C)    per-dy band matrices (dx taps + channel mix + col padding)
    # b*_ref: (1, W*C)         bias, already tiled per pixel column
    # o_ref : (1, H, W*C)      lane-dense output slab
    H, WC = x_ref.shape[1], x_ref.shape[2]
    x = x_ref[0]                                     # (H, WC) f32, resident in VMEM

    zrow = jnp.zeros((1, WC), jnp.float32)

    def conv3x3(img, m_ref, b_ref):
        # One aligned MXU dot per dy tap; dy row-shift applied to the (tiny) results.
        p0 = jnp.dot(img, m_ref[0], preferred_element_type=jnp.float32)
        p1 = jnp.dot(img, m_ref[1], preferred_element_type=jnp.float32)
        p2 = jnp.dot(img, m_ref[2], preferred_element_type=jnp.float32)
        up = jnp.concatenate([zrow, p0[:H - 1]], axis=0)   # up[h] = p0[h-1], up[0]   = 0
        dn = jnp.concatenate([p2[1:], zrow], axis=0)        # dn[h] = p2[h+1], dn[H-1] = 0
        bias = jnp.broadcast_to(b_ref[...], (H, WC))        # hoisted, once per conv
        return bias + up + p1 + dn                           # (H, WC) f32

    hidden = jnp.maximum(conv3x3(x, m1_ref, b1_ref), 0.0)    # conv1 + ReLU
    out = conv3x3(hidden, m2_ref, b2_ref) + x                 # conv2 + residual (resident x)
    o_ref[0] = out.astype(o_ref.dtype)                        # one dense slab store


def _band_matrices(w_hwio, W):
    """Fold dx taps, channel contraction and left/right SAME padding into 3 matrices.

    M[dy][(w+dx-1)*C + c, w*C + o] = w[dy, dx, c, o]   (entries with w+dx-1 outside
    [0, W) are simply absent -> zero column padding for free).
    """
    C = w_hwio.shape[2]
    mats = []
    for dy in range(3):
        m = sum(jnp.kron(jnp.eye(W, k=1 - dx, dtype=w_hwio.dtype), w_hwio[dy, dx])
                for dx in range(3))
        mats.append(m)
    return jnp.stack(mats)                            # (3, W*C, W*C)


def residual_block(x_nchw, w1, b1, w2, b2):
    """x_nchw: (N, C, H, W) f32; w1/w2: HWIO (3, 3, C, C); b1/b2: (C,). Returns NCHW.

    (Real PyTorch Conv2d weights are OIHW; convert with w.permute(2, 3, 1, 0) -> HWIO.)
    """
    N, C, H, W = x_nchw.shape
    WC = W * C

    # Lane-dense slabs: channels-last, then fold W and C into the lane dim (free reshape).
    x = jnp.transpose(x_nchw, (0, 2, 3, 1)).reshape(N, H, WC)

    # Tiny wrapper-side precompute (weights are 3*3*C*C): zero in-kernel cost.
    m1 = _band_matrices(w1, W)
    m2 = _band_matrices(w2, W)
    b1r = jnp.tile(b1, W).reshape(1, WC)
    b2r = jnp.tile(b2, W).reshape(1, WC)

    out = pl.pallas_call(
        resblock_kernel,
        out_shape=jax.ShapeDtypeStruct((N, H, WC), x.dtype),
        grid_spec=pltpu.PrefetchScalarGridSpec(
            num_scalar_prefetch=0,
            grid=(N,),
            in_specs=[
                pl.BlockSpec((1, H, WC), lambda n: (n, 0, 0)),     # x (single input DMA)
                pl.BlockSpec((3, WC, WC), lambda n: (0, 0, 0)),    # conv1 band matrices
                pl.BlockSpec((1, WC), lambda n: (0, 0)),           # conv1 bias
                pl.BlockSpec((3, WC, WC), lambda n: (0, 0, 0)),    # conv2 band matrices
                pl.BlockSpec((1, WC), lambda n: (0, 0)),           # conv2 bias
            ],
            out_specs=pl.BlockSpec((1, H, WC), lambda n: (n, 0, 0)),
        ),
        compiler_params=pltpu.CompilerParams(
            dimension_semantics=("parallel",),   # batch items across v7x's 2 TCs
        ),
    )(x, m1, b1r, m2, b2r)

    return jnp.transpose(out.reshape(N, H, W, C), (0, 3, 1, 2))   # back to NCHW


def reference(x_nchw, w1, b1, w2, b2):
    """Plain-JAX reference matching torch semantics (cross-correlation, SAME padding)."""
    x = jnp.transpose(x_nchw, (0, 2, 3, 1))
    dn = ("NHWC", "HWIO", "NHWC")
    y = lax.conv_general_dilated(x, w1, (1, 1), "SAME", dimension_numbers=dn) + b1
    y = jnp.maximum(y, 0.0)
    y = lax.conv_general_dilated(y, w2, (1, 1), "SAME", dimension_numbers=dn) + b2
    y = y + x
    return jnp.transpose(y, (0, 3, 1, 2))


if __name__ == "__main__":
    key = jax.random.PRNGKey(0)
    k_x, k_w1, k_b1, k_w2, k_b2 = jax.random.split(key, 5)

    N, C, H, W = 2, 4, 16, 16
    x = jax.random.normal(k_x, (N, C, H, W), jnp.float32)

    # Deterministic init, shapes per nn.Conv2d(channels, channels, 3, padding=1).
    fan_in = C * 3 * 3
    bound = 1.0 / (fan_in ** 0.5)
    w1 = jax.random.uniform(k_w1, (3, 3, C, C), jnp.float32, -bound, bound)
    b1 = jax.random.uniform(k_b1, (C,), jnp.float32, -bound, bound)
    w2 = jax.random.uniform(k_w2, (3, 3, C, C), jnp.float32, -bound, bound)
    b2 = jax.random.uniform(k_b2, (C,), jnp.float32, -bound, bound)

    out = residual_block(x, w1, b1, w2, b2)
    jax.block_until_ready(out)

    ref = reference(x, w1, b1, w2, b2)
    err = float(jnp.max(jnp.abs(out - ref)))
    assert out.shape == (N, C, H, W) and out.dtype == jnp.float32
    assert jnp.allclose(out, ref, atol=1e-4, rtol=1e-4), f"max abs err {err}"
    print("KERNEL_OK")
</pallas_src>

<mosaic_0001>
module attributes {stable_mosaic.version = 11 : i64} {
  func.func @resblock_kernel(%arg0: i32, %arg1: memref<1x16x64xf32, #tpu.memory_space<vmem>>, %arg2: memref<3x64x64xf32, #tpu.memory_space<vmem>>, %arg3: memref<1x64xf32, #tpu.memory_space<vmem>>, %arg4: memref<3x64x64xf32, #tpu.memory_space<vmem>>, %arg5: memref<1x64xf32, #tpu.memory_space<vmem>>, %arg6: memref<1x16x64xf32, #tpu.memory_space<vmem>>) attributes {dimension_semantics = [#tpu.dimension_semantics<parallel>], iteration_bounds = array<i64: 2>, scalar_prefetch = 0 : i64, scratch_operands = 0 : i64, tpu.core_type = #tpu.core_type<tc>, window_params = [{transform_indices = @transform_0, window_bounds = array<i64: 1, 16, 64>}, {pipeline_mode = #tpu.pipeline_mode<synchronous>, transform_indices = @transform_1, window_bounds = array<i64: 3, 64, 64>}, {pipeline_mode = #tpu.pipeline_mode<synchronous>, transform_indices = @transform_2, window_bounds = array<i64: 1, 64>}, {pipeline_mode = #tpu.pipeline_mode<synchronous>, transform_indices = @transform_3, window_bounds = array<i64: 3, 64, 64>}, {pipeline_mode = #tpu.pipeline_mode<synchronous>, transform_indices = @transform_4, window_bounds = array<i64: 1, 64>}, {transform_indices = @transform_5, window_bounds = array<i64: 1, 16, 64>}]} {
    %c0 = arith.constant 0 : index
    %c0_0 = arith.constant 0 : index
    %c0_1 = arith.constant 0 : index
    %0 = vector.load %arg1[%c0, %c0_0, %c0_1] : memref<1x16x64xf32, #tpu.memory_space<vmem>>, vector<1x16x64xf32>
    %1 = vector.shape_cast %0 : vector<1x16x64xf32> to vector<16x64xf32>
    %cst = arith.constant 0.000000e+00 : f32
    %2 = vector.broadcast %cst : f32 to vector<1x64xf32>
    %c0_2 = arith.constant 0 : index
    %c0_3 = arith.constant 0 : index
    %c0_4 = arith.constant 0 : index
    %3 = vector.load %arg2[%c0_2, %c0_3, %c0_4] : memref<3x64x64xf32, #tpu.memory_space<vmem>>, vector<1x64x64xf32>
    %4 = vector.shape_cast %3 : vector<1x64x64xf32> to vector<64x64xf32>
    %cst_5 = arith.constant dense<0.000000e+00> : vector<16x64xf32>
    %5 = tpu.matmul %1, %4, %cst_5 {dimension_numbers = #tpu.dot_dimension_numbers<[1], [0], [0], [1], [0, 0, 1, 1], [], []>} : vector<16x64xf32>, vector<64x64xf32>, vector<16x64xf32> -> vector<16x64xf32>
    %c1 = arith.constant 1 : index
    %c0_6 = arith.constant 0 : index
    %c0_7 = arith.constant 0 : index
    %6 = vector.load %arg2[%c1, %c0_6, %c0_7] : memref<3x64x64xf32, #tpu.memory_space<vmem>>, vector<1x64x64xf32>
    %7 = vector.shape_cast %6 : vector<1x64x64xf32> to vector<64x64xf32>
    %cst_8 = arith.constant dense<0.000000e+00> : vector<16x64xf32>
    %8 = tpu.matmul %1, %7, %cst_8 {dimension_numbers = #tpu.dot_dimension_numbers<[1], [0], [0], [1], [0, 0, 1, 1], [], []>} : vector<16x64xf32>, vector<64x64xf32>, vector<16x64xf32> -> vector<16x64xf32>
    %c2 = arith.constant 2 : index
    %c0_9 = arith.constant 0 : index
    %c0_10 = arith.constant 0 : index
    %9 = vector.load %arg2[%c2, %c0_9, %c0_10] : memref<3x64x64xf32, #tpu.memory_space<vmem>>, vector<1x64x64xf32>
    %10 = vector.shape_cast %9 : vector<1x64x64xf32> to vector<64x64xf32>
    %cst_11 = arith.constant dense<0.000000e+00> : vector<16x64xf32>
    %11 = tpu.matmul %1, %10, %cst_11 {dimension_numbers = #tpu.dot_dimension_numbers<[1], [0], [0], [1], [0, 0, 1, 1], [], []>} : vector<16x64xf32>, vector<64x64xf32>, vector<16x64xf32> -> vector<16x64xf32>
    %12 = vector.extract_strided_slice %5 {offsets = [0, 0], sizes = [15, 64], strides = [1, 1]} : vector<16x64xf32> to vector<15x64xf32>
    %13 = tpu.concatenate %2, %12 in 0 : vector<1x64xf32>, vector<15x64xf32> -> vector<16x64xf32>
    %14 = vector.extract_strided_slice %11 {offsets = [1, 0], sizes = [15, 64], strides = [1, 1]} : vector<16x64xf32> to vector<15x64xf32>
    %15 = tpu.concatenate %14, %2 in 0 : vector<15x64xf32>, vector<1x64xf32> -> vector<16x64xf32>
    %c0_12 = arith.constant 0 : index
    %c0_13 = arith.constant 0 : index
    %16 = vector.load %arg3[%c0_12, %c0_13] : memref<1x64xf32, #tpu.memory_space<vmem>>, vector<1x64xf32>
    %17 = vector.shape_cast %16 : vector<1x64xf32> to vector<1x64xf32>
    %18 = vector.broadcast %17 : vector<1x64xf32> to vector<16x64xf32>
    %19 = arith.addf %18, %13 : vector<16x64xf32>
    %20 = arith.addf %19, %8 : vector<16x64xf32>
    %21 = arith.addf %20, %15 : vector<16x64xf32>
    %cst_14 = arith.constant 0.000000e+00 : f32
    %22 = vector.broadcast %cst_14 : f32 to vector<16x64xf32>
    %23 = arith.maximumf %21, %22 : vector<16x64xf32>
    %c0_15 = arith.constant 0 : index
    %c0_16 = arith.constant 0 : index
    %c0_17 = arith.constant 0 : index
    %24 = vector.load %arg4[%c0_15, %c0_16, %c0_17] : memref<3x64x64xf32, #tpu.memory_space<vmem>>, vector<1x64x64xf32>
    %25 = vector.shape_cast %24 : vector<1x64x64xf32> to vector<64x64xf32>
    %cst_18 = arith.constant dense<0.000000e+00> : vector<16x64xf32>
    %26 = tpu.matmul %23, %25, %cst_18 {dimension_numbers = #tpu.dot_dimension_numbers<[1], [0], [0], [1], [0, 0, 1, 1], [], []>} : vector<16x64xf32>, vector<64x64xf32>, vector<16x64xf32> -> vector<16x64xf32>
    %c1_19 = arith.constant 1 : index
    %c0_20 = arith.constant 0 : index
    %c0_21 = arith.constant 0 : index
    %27 = vector.load %arg4[%c1_19, %c0_20, %c0_21] : memref<3x64x64xf32, #tpu.memory_space<vmem>>, vector<1x64x64xf32>
    %28 = vector.shape_cast %27 : vector<1x64x64xf32> to vector<64x64xf32>
    %cst_22 = arith.constant dense<0.000000e+00> : vector<16x64xf32>
    %29 = tpu.matmul %23, %28, %cst_22 {dimension_numbers = #tpu.dot_dimension_numbers<[1], [0], [0], [1], [0, 0, 1, 1], [], []>} : vector<16x64xf32>, vector<64x64xf32>, vector<16x64xf32> -> vector<16x64xf32>
    %c2_23 = arith.constant 2 : index
    %c0_24 = arith.constant 0 : index
    %c0_25 = arith.constant 0 : index
    %30 = vector.load %arg4[%c2_23, %c0_24, %c0_25] : memref<3x64x64xf32, #tpu.memory_space<vmem>>, vector<1x64x64xf32>
    %31 = vector.shape_cast %30 : vector<1x64x64xf32> to vector<64x64xf32>
    %cst_26 = arith.constant dense<0.000000e+00> : vector<16x64xf32>
    %32 = tpu.matmul %23, %31, %cst_26 {dimension_numbers = #tpu.dot_dimension_numbers<[1], [0], [0], [1], [0, 0, 1, 1], [], []>} : vector<16x64xf32>, vector<64x64xf32>, vector<16x64xf32> -> vector<16x64xf32>
    %33 = vector.extract_strided_slice %26 {offsets = [0, 0], sizes = [15, 64], strides = [1, 1]} : vector<16x64xf32> to vector<15x64xf32>
    %34 = tpu.concatenate %2, %33 in 0 : vector<1x64xf32>, vector<15x64xf32> -> vector<16x64xf32>
    %35 = vector.extract_strided_slice %32 {offsets = [1, 0], sizes = [15, 64], strides = [1, 1]} : vector<16x64xf32> to vector<15x64xf32>
    %36 = tpu.concatenate %35, %2 in 0 : vector<15x64xf32>, vector<1x64xf32> -> vector<16x64xf32>
    %c0_27 = arith.constant 0 : index
    %c0_28 = arith.constant 0 : index
    %37 = vector.load %arg5[%c0_27, %c0_28] : memref<1x64xf32, #tpu.memory_space<vmem>>, vector<1x64xf32>
    %38 = vector.shape_cast %37 : vector<1x64xf32> to vector<1x64xf32>
    %39 = vector.broadcast %38 : vector<1x64xf32> to vector<16x64xf32>
    %40 = arith.addf %39, %34 : vector<16x64xf32>
    %41 = arith.addf %40, %29 : vector<16x64xf32>
    %42 = arith.addf %41, %36 : vector<16x64xf32>
    %43 = arith.addf %42, %1 : vector<16x64xf32>
    %c0_29 = arith.constant 0 : index
    %c0_30 = arith.constant 0 : index
    %c0_31 = arith.constant 0 : index
    %44 = vector.load %arg6[%c0_29, %c0_30, %c0_31] : memref<1x16x64xf32, #tpu.memory_space<vmem>>, vector<1x16x64xf32>
    %45 = vector.shape_cast %44 : vector<1x16x64xf32> to vector<16x64xf32>
    %46 = vector.shape_cast %43 : vector<16x64xf32> to vector<1x16x64xf32>
    tpu.vector_store %arg6[%c0_29, %c0_30, %c0_31], %46 {strides = array<i32>} : memref<1x16x64xf32, #tpu.memory_space<vmem>>, vector<1x16x64xf32>,
    return
  }
  func.func @transform_0(%arg0: i32) -> (i32, i32, i32) {
    %c0_i32 = arith.constant 0 : i32
    %c0_i32_0 = arith.constant 0 : i32
    %c0_i32_1 = arith.constant 0 : i32
    return %arg0, %c0_i32, %c0_i32_0 : i32, i32, i32
  }
  func.func @transform_1(%arg0: i32) -> (i32, i32, i32) {
    %c0_i32 = arith.constant 0 : i32
    %c0_i32_0 = arith.constant 0 : i32
    %c0_i32_1 = arith.constant 0 : i32
    %c0_i32_2 = arith.constant 0 : i32
    return %c0_i32, %c0_i32_0, %c0_i32_1 : i32, i32, i32
  }
  func.func @transform_2(%arg0: i32) -> (i32, i32) {
    %c0_i32 = arith.constant 0 : i32
    %c0_i32_0 = arith.constant 0 : i32
    %c0_i32_1 = arith.constant 0 : i32
    return %c0_i32, %c0_i32_0 : i32, i32
  }
  func.func @transform_3(%arg0: i32) -> (i32, i32, i32) {
    %c0_i32 = arith.constant 0 : i32
    %c0_i32_0 = arith.constant 0 : i32
    %c0_i32_1 = arith.constant 0 : i32
    %c0_i32_2 = arith.constant 0 : i32
    return %c0_i32, %c0_i32_0, %c0_i32_1 : i32, i32, i32
  }
  func.func @transform_4(%arg0: i32) -> (i32, i32) {
    %c0_i32 = arith.constant 0 : i32
    %c0_i32_0 = arith.constant 0 : i32
    %c0_i32_1 = arith.constant 0 : i32
    return %c0_i32, %c0_i32_0 : i32, i32
  }
  func.func @transform_5(%arg0: i32) -> (i32, i32, i32) {
    %c0_i32 = arith.constant 0 : i32
    %c0_i32_0 = arith.constant 0 : i32
    %c0_i32_1 = arith.constant 0 : i32
    return %arg0, %c0_i32, %c0_i32_0 : i32, i32, i32
  }
}

</mosaic_0001>

<bundles_post_ra>
// kernel: tpu_custom_call.1
= control target key start
LH: loop header
LB: loop body
LE: loop exit
PB: predicated region body
PF: predicated region fallthrough
CT: control target
= control target key end

     0   :  { %10 = vsyncpa [#allocation3], 0  ;;  %s1673_s0 = inlined_call_operand.hbm [shape: f32[2,16,64], index: 0, kind: input, shape index: {}]   ;;  %s1674_s1 = inlined_call_operand.hbm [shape: f32[3,64,64], index: 1, kind: input, shape index: {}]   ;;  %s1675_s2 = inlined_call_operand.vmem [shape: f32[1,64], index: 2, kind: input, shape index: {}]   ;;  %s1676_s3 = inlined_call_operand.hbm [shape: f32[3,64,64], index: 3, kind: input, shape index: {}]   ;;  %s1677_s4 = inlined_call_operand.vmem [shape: f32[1,64], index: 4, kind: input, shape index: {}]   ;;  %s1678_s5 = inlined_call_operand.hbm [shape: f32[2,16,64], index: 5, kind: output, shape index: {}]  }
   0x1   :  { %12 = vsyncpa [#allocation3 + $0x1], 0 }
   0x2   :  { %13 = vsyncpa [#allocation6], 0 }
   0x3   :  { %14 = vsyncpa [#allocation4], 0 }
   0x4   :  { %16 = vsyncpa [#allocation4 + $0x1], 0  ;;  %s1428_s18 = smov 0   ;;  %s1430_s19 = smov 0  }
   0x5   :  { %s1432_s20 = smov 0   ;;  %s1434_s21 = smov 0  }
   0x6 LB: > { %s1449_s22 = sadd.s32 4294967295, %s1388_s21   ;;  %s961_s23 = sadd.s32 4294967294, %s1388_s21   ;;  %s1388_s21 = sphi %s1434_s21, %s1701_s21   ;;  %s1384_s20 = sphi %s1432_s20, %s1700_s20   ;;  %s1380_s19 = sphi %s1430_s19, %s1699_s19   ;;  %s1376_s18 = sphi %s1428_s18, %s1698_s18  }
   0x7   : > { %p42_p0 = scmp.ne.s32.totalorder %s1380_s19, %s1376_s18  ;;  %p1679_p1 = scmp.eq.s32.totalorder %s1449_s22, 0 }
   0x8   : > { %p150_p2 = scmp.eq.s32.totalorder %s1449_s22, 1  ;;  %p156_p3 = scmp.eq.s32.totalorder %s961_s23, 1 }
   0x9   : > { %p1458_p4 = por %p1679_p1, %p42_p0  ;;  %p962_p5 = scmp.ge.s32.totalorder %s1388_s21, 1 }
   0xa   : > { %p1463_p6 = por %p156_p3, %p42_p0  ;;  %p163_p7 = scmp.lt.s32.totalorder %s1388_s21, 3 }
   0xb   : > { %s1684_s24 = scalar_select %p1458_p4, 1, 0 }
   0xc   : > { %s1685_s25 = scalar_select %p1463_p6, 1, 0 }
   0xd   : > { %p1468_p8 = pnand %p962_p5, %p163_p7  ;;  %s1390_s27 = smov [#allocation5]  }
   0xe   : > { %s175_s28 = sshll.u32 %s1390_s27, 4  ;;  %s1391_s30 = smov [#allocation7]   ;;  %s176_s28 = int_to_ptr.vmem [resolvable:$true] %s175_s28 }
   0xf   : > { %s1686_s26 = scalar_select %p1468_p8, 1, 0 }
  0x10   : > { %p1181_p9 = pneg %p1468_p8  ;;  %s191_s6 = sshll.u32 %s1391_s30, 4  ;;  %s192_s6 = int_to_ptr.vmem [resolvable:$true] %s191_s6 }
  0x11   : > { %s1251_s7 = scalar_lea.vmem %s176_s28, 3072  ;;  %p1259_p5 = scmp.lt.s32.totalorder %s176_s28, %s176_s28 }
  0x12   : > { %p1477_p11 = pnand %p1181_p9, %p1679_p1  ;;  %p1252_p13 = scmp.ne.s32.totalorder %s176_s28, %s1251_s7 }
  0x13   : > { %p1260_p7 = scmp.lt.s32.totalorder %s1251_s7, %s1251_s7 }
  0x14   : > { %p1242_p12 = pneg %p1477_p11 }
  0x15   : > { %p1261_p10 = por %p1260_p7, %p1259_p5 }
  0x16   : > { %p1254_p0 = pnand %p1252_p13, %p1242_p12 }
  0x18   : > { %p1255_p3 = pneg %p1254_p0 }
  0x1a   : > { %p1262_p9 = pnand %p1261_p10, %p1255_p3 }
  0x1c   : > { %1265 = shalt.err (!%p1262_p9)
}
  0x1d   : > { %s1680_s8 = smov 128   ;;  %s1393_s9 = smov 8  }
  0x1e   : > { %1184 = dma.hbm_to_vmem [thread:$0]  (!%p1477_p11), %s1674_s1, 3072, %s176_s28, [#allocation6], %s1680_s8, %s1680_s8, %s1393_s9  }
  0x1f   : > { %s1277_s12 = scalar_lea.vmem %s192_s6, 3072  ;;  %p1285_p10 = scmp.lt.s32.totalorder %s192_s6, %s192_s6 }
  0x20   : > { %p1278_p13 = scmp.ne.s32.totalorder %s192_s6, %s1277_s12  ;;  %p1286_p3 = scmp.lt.s32.totalorder %s1277_s12, %s1277_s12 }
  0x22   : > { %p1280_p0 = pnand %p1278_p13, %p1242_p12  ;;  %p1287_p7 = por %p1286_p3, %p1285_p10 }
  0x24   : > { %p1281_p5 = pneg %p1280_p0 }
  0x26   : > { %p1288_p9 = pnand %p1287_p7, %p1281_p5 }
  0x28   : > { %1291 = shalt.err (!%p1288_p9)
}
  0x29   : > { %1187 = dma.hbm_to_vmem [thread:$0]  (!%p1477_p11), %s1676_s3, 3072, %s192_s6, [#allocation6], %s1680_s8, %s1680_s8, %s1393_s9  }
  0x2a   : > { %s1506_s15 = sadd.s32 1, %s1388_s21   ;;  %s29_s16 = sadd.s32 1, %s1384_s20 }
  0x2b   : > { %s26_s17 = ssub.s32 %s1388_s21, %s1506_s15  ;;  %p36_p12 = scmp.ne.s32.totalorder %s1384_s20, %s1380_s19 }
  0x2c   : > { %p27_p13 = scmp.eq.s32.totalorder %s26_s17, 0  ;;  %p37_p0 = scmp.eq.s32.totalorder %s1388_s21, 0 }
  0x2d   : > { %p1516_p5 = por %p150_p2, %p36_p12  ;;  %p1198_p10 = scmp.lt.s32.totalorder %s1388_s21, 2 }
  0x2e   : > { %s1522_s27 = scalar_select %p27_p13, %s1384_s20, %s29_s16  }
  0x2f   : > { %s1688_s23 = scalar_select %p1516_p5, 1, 0 }
  0x30   : > { %p38_p3 = por %p37_p0, %p36_p12  ;;  %s208_s28 = sand.u32 1, %s1384_s20  }
  0x31   : > { %s966_s29 = sshll.u32 %s208_s28, 4  ;;  %s993_s30 = sshll.u32 %s1388_s21, 8 }
  0x32   : > { %s1529_s10 = scalar_lea.hbm %s1673_s0, %s993_s30  ;;  %s212_s11 = scalar_lea.vmem [#allocation2], %s966_s29 }
  0x33   : > { %s219_s12 = sshll.u32 %s212_s11, 4  ;;  %p1533_p2 = pnand %p1198_p10, %p38_p3  ;;  %s1531_s12 = int_to_ptr.vmem [resolvable:$true] %s219_s12 }
  0x34   : > { %s1537_s14 = scalar_lea.sflag [#allocation3], %s208_s28  ;;  %s1292_s16 = scalar_lea.hbm %s1529_s10, 256 }
  0x35   : > { %p1293_p11 = scmp.ne.s32.totalorder %s1529_s10, %s1292_s16  ;;  %p1294_p7 = pneg %p1533_p2 }
  0x36   : > { %s1297_s29 = scalar_lea.hbm %s1673_s0, 512  ;;  %p1298_p13 = scmp.lt.s32.totalorder %s1529_s10, %s1673_s0 }
  0x37   : > { %p1295_p9 = pnand %p1294_p7, %p1293_p11  ;;  %p1299_p0 = scmp.lt.s32.totalorder %s1297_s29, %s1292_s16 }
  0x39   : > { %p1296_p12 = pneg %p1295_p9  ;;  %p1300_p10 = por %p1299_p0, %p1298_p13 }
  0x3b   : > { %p1301_p3 = pnand %p1300_p10, %p1296_p12 }
  0x3d   : > { %1304 = shalt.err (!%p1301_p3)
}
  0x3e   : > { %s1305_s28 = scalar_lea.vmem %s1531_s12, 256  ;;  %s1394_s11 = smov [#allocation2]  }
  0x3f   : > { %p1306_p1 = scmp.ne.s32.totalorder %s1531_s12, %s1305_s28  ;;  %s1310_s8 = sshll.u32 %s1394_s11, 4  ;;  %s1311_s8 = int_to_ptr.vmem [resolvable:$false] %s1310_s8 }
  0x40   : > { %s1312_s17 = scalar_lea.vmem %s1311_s8, 512  ;;  %p1313_p9 = scmp.lt.s32.totalorder %s1531_s12, %s1311_s8 }
  0x41   : > { %p1308_p6 = pnand %p1306_p1, %p1294_p7  ;;  %p1314_p5 = scmp.lt.s32.totalorder %s1312_s17, %s1305_s28 }
  0x43   : > { %p1309_p11 = pneg %p1308_p6  ;;  %p1315_p4 = por %p1314_p5, %p1313_p9 }
  0x45   : > { %p1316_p8 = pnand %p1315_p4, %p1309_p11 }
  0x47   : > { %1319 = shalt.err (!%p1316_p8)
}
  0x48   : > { %s1690_s16 = smov 128   ;;  %p1691_p1 = scmp.ne.s32.totalorder %s1686_s26, 0 }
  0x49   : > { %1191 = dma.hbm_to_vmem [thread:$0]  (!%p1533_p2), %s1529_s10, 256, %s1531_s12, %s1537_s14, %s1690_s16, %s1690_s16, %s1393_s9  }
  0x4a   : > { %231 = sbr.rel (%p1691_p1) target bundleno = 551 (0x227), region = 40  ;;  %s1564_s30 = sand.u32 (!%p1691_p1), 1, %s1380_s19  }
  0x4b   : > { %s970_s8 = sshll.u32 (!%p1691_p1), %s1564_s30, 4  ;;  %s234_s29 = scalar_lea.sflag (!%p1691_p1), [#allocation3], %s1564_s30 }
  0x4c   : > { %s1570_s13 = scalar_lea.vmem (!%p1691_p1), [#allocation2], %s970_s8  ;;  %p1692_p4 = scmp.ne.s32.totalorder (!%p1691_p1), %s1684_s24, 0 }
  0x4f   : > { %1363 = dma.done.wait (%p1692_p4), %s234_s29, 256  }
  0x50   : > { %1365 = vsyncadd (%p1692_p4), %s234_s29, 4294967040  ;;  %p1693_p6 = scmp.eq.s32.totalorder %s1449_s22, 0 }
  0x52   : > { %1367 = dma.done.wait (%p1693_p6), [#allocation6], 6144   ;;  %p1694_p8 = pmov %p1693_p6 }
  0x53   : > { %v281_v0 = vld [vmem:[#allocation5 + $0x38] sm:$0xff]  ;;  %v280_v1 = vld [vmem:[#allocation5 + $0x30] sm:$0xff]  ;;  %v279_v4 = vld [vmem:[#allocation5 + $0x28] sm:$0xff]  ;;  %vm282_vm0 = vcmask 523264   ;;  %vm534_vm1 = vcmask 1040384   ;;  %vm543_vm2 = vcmask 1046528  }
  0x54   : > { %1369 = vsyncadd (%p1694_p8), [#allocation6], 4294961152  ;;  %1055 = vmatprep.subr.mxu0 %v281_v0  ;;  %v372_v2 = vld [vmem:[#allocation5 + $0x78] sm:$0xff]  ;;  %v371_v3 = vld [vmem:[#allocation5 + $0x70] sm:$0xff]  ;;  %s994_s12 = sshll.u32 %s1449_s22, 8  ;;  %s271_s14 = scalar_lea.vmem [#allocation8], %s970_s8 }
  0x55   : > { %1056 = vmatpush3.msra.mxu0 %v281_v0  ;;  %1074 = vmatprep.subr.mxu1 %v372_v2  ;;  %v370_v5 = vld [vmem:[#allocation5 + $0x68] sm:$0xff]  ;;  %v278_v6 = vld [vmem:[#allocation5 + $0x20] sm:$0xff]  ;;  %v277_v8 = vld [vmem:[#allocation5 + $0x18] sm:$0xff]  ;;  %s869_s6 = sshll.u32 %s271_s14, 4  ;;  %s1625_s11 = scalar_lea.hbm %s1678_s5, %s994_s12  ;;  %s1627_s6 = int_to_ptr.vmem [resolvable:$true] %s869_s6 }
  0x56   : > { %1057 = vmatprep.subr.mxu0 %v280_v1  ;;  %1075 = vmatpush3.msra.mxu1 %v372_v2  ;;  %v369_v7 = vld [vmem:[#allocation5 + $0x60] sm:$0xff]  ;;  %v368_v9 = vld [vmem:[#allocation5 + $0x58] sm:$0xff]  ;;  %v276_v10 = vld [vmem:[#allocation5 + $0x10] sm:$0xff]  ;;  %s856_s22 = scalar_lea.sflag [#allocation4], %s1564_s30  ;;  %s1320_s17 = scalar_lea.vmem %s1627_s6, 256 }
  0x57   : > { %1058 = vmatpush3.msra.mxu0 %v280_v1  ;;  %1076 = vmatprep.subr.mxu1 %v371_v3  ;;  %v1581_v11 = vld [vmem:[%s1570_s13] sm:$0xff]  ;;  %v275_v12 = vld [vmem:[#allocation5 + $0x8] sm:$0xff]  ;;  %v456_v17 = vld [vmem:[#allocation5 + $0xb8] sm:$0xff]  ;;  %p1321_p5 = scmp.ne.s32.totalorder %s1627_s6, %s1320_s17  ;;  %p1695_p2 = scmp.ne.s32.totalorder %s1688_s23, 0 }
  0x58   : > { %1059 = vmatprep.subr.mxu0 %v279_v4  ;;  %1077 = vmatpush3.msra.mxu1 %v371_v3  ;;  %v367_v13 = vld [vmem:[#allocation5 + $0x50] sm:$0xff]  ;;  %v274_v14 = vld [vmem:[#allocation5] sm:$0xff]  ;;  %v366_v15 = vld [vmem:[#allocation5 + $0x48] sm:$0xff]  ;;  %s1395_s16 = smov [#allocation8]  }
  0x59   : > { %1060 = vmatpush3.msra.mxu0 %v279_v4  ;;  %1078 = vmatprep.subr.mxu1 %v370_v5  ;;  %v1586_v16 = vld [vmem:[%s1570_s13 + $0x8] sm:$0xff]  ;;  %v365_v18 = vld [vmem:[#allocation5 + $0x40] sm:$0xff]  ;;  %v455_v19 = vld [vmem:[#allocation5 + $0xb0] sm:$0xff]  ;;  %p1322_p7 = pnand %p1321_p5, %p1695_p2  ;;  %s1324_s8 = sshll.u32 %s1395_s16, 4  ;;  %s1325_s8 = int_to_ptr.vmem [resolvable:$false] %s1324_s8 }
  0x5a   : > { %1061 = vmatprep.subr.mxu0 %v278_v6  ;;  %1079 = vmatpush3.msra.mxu1 %v370_v5  ;;  %v454_v20 = vld [vmem:[#allocation5 + $0xa8] sm:$0xff]  ;;  %v453_v21 = vld [vmem:[#allocation5 + $0xa0] sm:$0xff]  ;;  %v452_v22 = vld [vmem:[#allocation5 + $0x98] sm:$0xff]  ;;  %s1326_s29 = scalar_lea.vmem %s1325_s8, 512  ;;  %p1327_p13 = scmp.lt.s32.totalorder %s1627_s6, %s1325_s8 }
  0x5b   : > { %1062 = vmatpush3.msra.mxu0 %v278_v6  ;;  %1080 = vmatprep.subr.mxu1 %v369_v7  ;;  %v451_v23 = vld [vmem:[#allocation5 + $0x90] sm:$0xff]  ;;  %v450_v24 = vld [vmem:[#allocation5 + $0x88] sm:$0xff]  ;;  %v449_v25 = vld [vmem:[#allocation5 + $0x80] sm:$0xff]  ;;  %p1323_p12 = pneg %p1322_p7  ;;  %p1328_p0 = scmp.lt.s32.totalorder %s1326_s29, %s1320_s17 }
  0x5c   : > { %1063 = vmatprep.subr.mxu0 %v277_v8  ;;  %1081 = vmatpush3.msra.mxu1 %v369_v7  ;;  %v572_v26 = vld [vmem:[#allocation7 + $0x38] sm:$0xff]  ;;  %v571_v28 = vld [vmem:[#allocation7 + $0x30] sm:$0xff]  ;;  %v570_v30 = vld [vmem:[#allocation7 + $0x28] sm:$0xff] }
  0x5d   : > { %1064 = vmatpush3.msra.mxu0 %v277_v8  ;;  %1082 = vmatprep.subr.mxu1 %v368_v9  ;;  %v662_v27 = vld [vmem:[#allocation7 + $0x78] sm:$0xff]  ;;  %v661_v29 = vld [vmem:[#allocation7 + $0x70] sm:$0xff]  ;;  %v660_v31 = vld [vmem:[#allocation7 + $0x68] sm:$0xff]  ;;  %p1329_p10 = por %p1328_p0, %p1327_p13 }
  0x5e   : > { %1065 = vmatprep.subr.mxu0 %v276_v10  ;;  %1083 = vmatpush3.msra.mxu1 %v368_v9  ;;  %v569_v32 = vld [vmem:[#allocation7 + $0x20] sm:$0xff]  ;;  %v568_v34 = vld [vmem:[#allocation7 + $0x18] sm:$0xff]  ;;  %v567_v36 = vld [vmem:[#allocation7 + $0x10] sm:$0xff] }
  0x5f   : > { %1066 = vmatpush3.msra.mxu0 %v276_v10  ;;  %1071 = vmatprep.mubr.msk.f32.mxu0 %vm282_vm0, %v1581_v11  ;;  %v659_v33 = vld [vmem:[#allocation7 + $0x60] sm:$0xff]  ;;  %v658_v35 = vld [vmem:[#allocation7 + $0x58] sm:$0xff]  ;;  %v657_v37 = vld [vmem:[#allocation7 + $0x50] sm:$0xff]  ;;  %p1330_p3 = pnand %p1329_p10, %p1323_p12 }
  0x60   : > { %1067 = vmatprep.subr.mxu0 %v275_v12  ;;  %1084 = vmatprep.subr.mxu1 %v367_v13  ;;  %v566_v38 = vld [vmem:[#allocation7 + $0x8] sm:$0xff]  ;;  %v565_v40 = vld [vmem:[#allocation7] sm:$0xff]  ;;  %v746_v42 = vld [vmem:[#allocation7 + $0xb8] sm:$0xff] }
  0x61   : > { %1068 = vmatpush3.msra.mxu0 %v275_v12  ;;  %1085 = vmatpush3.msra.mxu1 %v367_v13  ;;  %v656_v39 = vld [vmem:[#allocation7 + $0x48] sm:$0xff]  ;;  %v655_v41 = vld [vmem:[#allocation7 + $0x40] sm:$0xff]  ;;  %v745_v2 = vld [vmem:[#allocation7 + $0xb0] sm:$0xff] }
  0x62   : > { %1069 = vmatprep.subr.mxu0 %v274_v14  ;;  %1086 = vmatprep.subr.mxu1 %v366_v15  ;;  %v980_v48 = vld [vmem:[%s1675_s2] ss:$0 sm:$0xff]  ;;  %v744_v3 = vld [vmem:[#allocation7 + $0xa8] sm:$0xff]  ;;  %v742_v5 = vld [vmem:[#allocation7 + $0x98] sm:$0xff] }
  0x63   : > { %1070 = vmatpush3.msra.mxu0 %v274_v14  ;;  %1087 = vmatpush3.msra.mxu1 %v366_v15  ;;  %v743_v4 = vld [vmem:[#allocation7 + $0xa0] sm:$0xff]  ;;  %v741_v6 = vld [vmem:[#allocation7 + $0x90] sm:$0xff]  ;;  %v740_v7 = vld [vmem:[#allocation7 + $0x88] sm:$0xff] }
  0x64   : > { %1072 = vmatmul.mubr.msk.f32.vlgmr.msra.gmra.mxu0 %vm282_vm0, %v1586_v16  ;;  %1093 = vmatprep.subr.mxu0 %v456_v17  ;;  %v739_v8 = vld [vmem:[#allocation7 + $0x80] sm:$0xff] }
  0x65   : > { %1094 = vmatpush3.msra.mxu0 %v456_v17  ;;  %1088 = vmatprep.subr.mxu1 %v365_v18  ;;  %v987_v15 = vld [vmem:[%s1677_s4] ss:$0 sm:$0xff] }
  0x66   : > { %1095 = vmatprep.subr.mxu0 %v455_v19  ;;  %1089 = vmatpush3.msra.mxu1 %v365_v18 }
  0x67   : > { %1096 = vmatpush3.msra.mxu0 %v455_v19  ;;  %1090 = vmatprep.mubr.msk.f32.mxu1 %vm282_vm0, %v1581_v11 }
  0x68   : > { %1097 = vmatprep.subr.mxu0 %v454_v20  ;;  %1091 = vmatmul.mubr.msk.f32.vlgmr.msra.gmra.mxu1 %vm282_vm0, %v1586_v16 }
  0x69   : > { %1098 = vmatpush3.msra.mxu0 %v454_v20  ;;  %1109 = vmatprep.mubr.msk.f32.mxu0 %vm282_vm0, %v1581_v11 }
  0x6a   : > { %1099 = vmatprep.subr.mxu0 %v453_v21  ;;  %1112 = vmatprep.subr.mxu1 %v572_v26 }
  0x6b   : > { %1100 = vmatpush3.msra.mxu0 %v453_v21  ;;  %1113 = vmatpush3.msra.mxu1 %v572_v26 }
  0x6c   : > { %1101 = vmatprep.subr.mxu0 %v452_v22  ;;  %1114 = vmatprep.subr.mxu1 %v571_v28 }
  0x6d   : > { %1102 = vmatpush3.msra.mxu0 %v452_v22  ;;  %1115 = vmatpush3.msra.mxu1 %v571_v28 }
  0x6e   : > { %1103 = vmatprep.subr.mxu0 %v451_v23  ;;  %1116 = vmatprep.subr.mxu1 %v570_v30 }
  0x6f   : > { %1104 = vmatpush3.msra.mxu0 %v451_v23  ;;  %1117 = vmatpush3.msra.mxu1 %v570_v30 }
  0x70   : > { %1105 = vmatprep.subr.mxu0 %v450_v24  ;;  %1118 = vmatprep.subr.mxu1 %v569_v32 }
  0x71   : > { %1106 = vmatpush3.msra.mxu0 %v450_v24  ;;  %1119 = vmatpush3.msra.mxu1 %v569_v32 }
  0x72   : > { %1107 = vmatprep.subr.mxu0 %v449_v25  ;;  %1120 = vmatprep.subr.mxu1 %v568_v34 }
  0x73   : > { %1108 = vmatpush3.msra.mxu0 %v449_v25  ;;  %1121 = vmatpush3.msra.mxu1 %v568_v34 }
  0x74   : > { %1110 = vmatmul.mubr.msk.f32.vlgmr.msra.gmra.mxu0 %vm282_vm0, %v1586_v16  ;;  %1131 = vmatprep.subr.mxu0 %v662_v27 }
  0x75   : > { %1132 = vmatpush3.msra.mxu0 %v662_v27  ;;  %1122 = vmatprep.subr.mxu1 %v567_v36 }
  0x76   : > { %1133 = vmatprep.subr.mxu0 %v661_v29  ;;  %1123 = vmatpush3.msra.mxu1 %v567_v36 }
  0x77   : > { %1134 = vmatpush3.msra.mxu0 %v661_v29  ;;  %1124 = vmatprep.subr.mxu1 %v566_v38 }
  0x78   : > { %1135 = vmatprep.subr.mxu0 %v660_v31  ;;  %1125 = vmatpush3.msra.mxu1 %v566_v38 }
  0x79   : > { %1136 = vmatpush3.msra.mxu0 %v660_v31  ;;  %1126 = vmatprep.subr.mxu1 %v565_v40 }
  0x7a   : > { %1137 = vmatprep.subr.mxu0 %v659_v33  ;;  %1127 = vmatpush3.msra.mxu1 %v565_v40 }
  0x7b   : > { %1138 = vmatpush3.msra.mxu0 %v659_v33  ;;  %1150 = vmatprep.subr.mxu1 %v746_v42 }
  0x7c   : > { %1139 = vmatprep.subr.mxu0 %v658_v35 }
  0x7d   : > { %1140 = vmatpush3.msra.mxu0 %v658_v35 }
  0x7e   : > { %1141 = vmatprep.subr.mxu0 %v657_v37 }
  0x7f   : > { %1142 = vmatpush3.msra.mxu0 %v657_v37 }
  0x80   : > { %1143 = vmatprep.subr.mxu0 %v656_v39 }
  0x81   : > { %1144 = vmatpush3.msra.mxu0 %v656_v39 }
  0x82   : > { %1145 = vmatprep.subr.mxu0 %v655_v41 }
  0x83   : > { %1146 = vmatpush3.msra.mxu0 %v655_v41 }
 0x124   : > { %v1073_v43 = vpop.f32.mrf.mxu0 }
 0x125   : > { %v536_v45 = vrot.slane %v1073_v43, 7 }
 0x126   : > { %v355_v44 = vpop.f32.mrf.mxu0 }
 0x127   : > { %v535_v46 = vrot.slane %v355_v44, 7 }
 0x128   : > { %v1092_v50 = vpop.f32.mrf.mxu1 }
 0x129   : > { %v537_v47 = vsel %vm534_vm1, %v535_v46, %v536_v45  ;;  %v540_v49 = vsel %vm534_vm1, 0.0, %v535_v46 }
 0x12a   : > { %v558_v51 = vadd.f32 %v980_v48, %v537_v47  ;;  %v557_v52 = vadd.f32 %v980_v48, %v540_v49  ;;  %v439_v54 = vpop.f32.mrf.mxu1 }
 0x12c   : > { %v560_v57 = vadd.f32 %v1092_v50, %v558_v51  ;;  %v559_v60 = vadd.f32 %v557_v52, %v439_v54 }
 0x134   : > { %v1111_v53 = vpop.f32.mrf.mxu0 }
 0x135   : > { %v545_v55 = vrot.slane %v1111_v53, 1 }
 0x136   : > { %v523_v56 = vpop.f32.mrf.mxu0 }
 0x137   : > { %v549_v58 = vsel %vm543_vm2, %v545_v55, 0.0  ;;  %v544_v59 = vrot.slane %v523_v56, 1 }
 0x138   : > { %v562_v61 = vadd.f32 %v560_v57, %v549_v58 }
 0x139   : > { %v546_v62 = vsel %vm543_vm2, %v544_v59, %v545_v55 }
 0x13a   : > { %v561_v63 = vadd.f32 %v559_v60, %v546_v62  ;;  %v564_v1 = vmax.f32 %v562_v61, 0.0 }
 0x13c   : > { %v563_v0 = vmax.f32 %v561_v63, 0.0 }
 0x13e   : > { %1128 = vmatprep.mubr.msk.f32.mxu1 %vm282_vm0, %v563_v0  ;;  %1147 = vmatprep.mubr.msk.f32.mxu0 %vm282_vm0, %v563_v0 }
 0x13f   : > { %1129 = vmatmul.mubr.msk.f32.vlgmr.msra.gmra.mxu1 %vm282_vm0, %v564_v1  ;;  %1148 = vmatmul.mubr.msk.f32.vlgmr.msra.gmra.mxu0 %vm282_vm0, %v564_v1 }
 0x140   : > { %1151 = vmatpush3.msra.mxu1 %v746_v42  ;;  %1166 = vmatprep.mubr.msk.f32.mxu1 %vm282_vm0, %v563_v0 }
 0x141   : > { %1152 = vmatprep.subr.mxu1 %v745_v2 }
 0x142   : > { %1153 = vmatpush3.msra.mxu1 %v745_v2 }
 0x143   : > { %1154 = vmatprep.subr.mxu1 %v744_v3 }
 0x144   : > { %1155 = vmatpush3.msra.mxu1 %v744_v3 }
 0x145   : > { %1156 = vmatprep.subr.mxu1 %v743_v4 }
 0x146   : > { %1157 = vmatpush3.msra.mxu1 %v743_v4 }
 0x147   : > { %1158 = vmatprep.subr.mxu1 %v742_v5 }
 0x148   : > { %1159 = vmatpush3.msra.mxu1 %v742_v5 }
 0x149   : > { %1160 = vmatprep.subr.mxu1 %v741_v6 }
 0x14a   : > { %1161 = vmatpush3.msra.mxu1 %v741_v6 }
 0x14b   : > { %1162 = vmatprep.subr.mxu1 %v740_v7 }
 0x14c   : > { %1163 = vmatpush3.msra.mxu1 %v740_v7 }
 0x14d   : > { %1164 = vmatprep.subr.mxu1 %v739_v8 }
 0x14e   : > { %1165 = vmatpush3.msra.mxu1 %v739_v8 }
 0x14f   : > { %1167 = vmatmul.mubr.msk.f32.vlgmr.msra.gmra.mxu1 %vm282_vm0, %v564_v1 }
 0x1ff   : > { %v1130_v9 = vpop.f32.mrf.mxu1  ;;  %v1149_v19 = vpop.f32.mrf.mxu0 }
 0x200   : > { %v825_v13 = vrot.slane %v1130_v9, 7 }
 0x201   : > { %v645_v10 = vpop.f32.mrf.mxu1  ;;  %v729_v25 = vpop.f32.mrf.mxu0 }
 0x202   : > { %v824_v12 = vrot.slane %v645_v10, 7 }
 0x204   : > { %v826_v14 = vsel %vm534_vm1, %v824_v12, %v825_v13  ;;  %v829_v17 = vsel %vm534_vm1, 0.0, %v824_v12 }
 0x205   : > { %v846_v18 = vadd.f32 %v987_v15, %v826_v14  ;;  %v845_v20 = vadd.f32 %v987_v15, %v829_v17 }
 0x207   : > { %v848_v23 = vadd.f32 %v1149_v19, %v846_v18  ;;  %v847_v28 = vadd.f32 %v845_v20, %v729_v25 }
 0x20f   : > { %v1168_v21 = vpop.f32.mrf.mxu1 }
 0x210   : > { %v833_v22 = vrot.slane %v1168_v21, 1 }
 0x211   : > { %v813_v24 = vpop.f32.mrf.mxu1 }
 0x212   : > { %v837_v26 = vsel %vm543_vm2, %v833_v22, 0.0  ;;  %v832_v27 = vrot.slane %v813_v24, 1 }
 0x213   : > { %v850_v29 = vadd.f32 %v848_v23, %v837_v26 }
 0x214   : > { %v834_v30 = vsel %vm543_vm2, %v832_v27, %v833_v22 }
 0x215   : > { %v852_v31 = vadd.f32 %v850_v29, %v1586_v16  ;;  %v849_v32 = vadd.f32 %v847_v28, %v834_v30 }
 0x217   : > { %854 = vst.msk [vmem:[%s271_s14 + $0x8] sm:$0xff] %vm282_vm0, %v852_v31  ;;  %v851_v33 = vadd.f32 %v849_v32, %v1581_v11 }
 0x219   : > { %853 = vst.msk [vmem:[%s271_s14] sm:$0xff] %vm282_vm0, %v851_v33 }
 0x21a   : > { %1333 = shalt.err (!%p1330_p3)
}
 0x21b   : > { %s1334_s13 = scalar_lea.hbm %s1625_s11, 256  ;;  %s1338_s9 = scalar_lea.hbm %s1678_s5, 512 }
 0x21c   : > { %p1335_p11 = scmp.ne.s32.totalorder %s1625_s11, %s1334_s13  ;;  %p1339_p4 = scmp.lt.s32.totalorder %s1625_s11, %s1678_s5 }
 0x21d   : > { %p1340_p6 = scmp.lt.s32.totalorder %s1338_s9, %s1334_s13 }
 0x21e   : > { %p1336_p9 = pnand %p1335_p11, %p1695_p2 }
 0x21f   : > { %p1341_p8 = por %p1340_p6, %p1339_p4 }
 0x220   : > { %p1337_p1 = pneg %p1336_p9 }
 0x222   : > { %p1342_p5 = pnand %p1341_p8, %p1337_p1 }
 0x224   : > { %1345 = shalt.err (!%p1342_p5)
}
 0x225   : > { %s1396_s14 = smov 128   ;;  %s1397_s7 = smov 8  }
 0x226   : > { %1179 = dma.vmem_to_hbm [thread:$0]  (%p1695_p2), %s1627_s6, 256, %s1625_s11, %s856_s22, %s1396_s14, %s1396_s14, %s1397_s7  }
 0x227 PF: > { %s884_s28 = sand.u32 1, %s1376_s18   ;;  %p1696_p7 = scmp.ne.s32.totalorder %s1685_s25, 0 }
 0x228   : > { %p1697_p12 = scmp.ge.s32.totalorder %s1388_s21, 2  ;;  %s885_s17 = scalar_lea.sflag [#allocation4], %s884_s28 }
 0x22a   : > { %p1193_p13 = pnand %p1697_p12, %p1696_p7 }
 0x22c   : > { %p1194_p0 = pneg %p1193_p13 }
 0x22e   : > { %1371 = dma.done.wait (%p1194_p0), %s885_s17, 256  }
 0x22f   : > { %1373 = vsyncadd (%p1194_p0), %s885_s17, 4294967040  ;;  %p19_p10 = scmp.ge.s32.totalorder %s1506_s15, 4   ;;  %s1698_s18 = smov %s1380_s19 }
 0x230   : > { %s1699_s19 = smov %s1384_s20  ;;  %s1700_s20 = smov %s1522_s27 }
 0x231   : > { %s1701_s21 = smov %s1506_s15  ;;  %21 = sbr.rel (!%p19_p10) target bundleno = 6 (0x6), region = 97 }
 0x236   :  { %890 = vsyncpa [#allocation3], 1 }
 0x237   :  { %892 = vsyncpa [#allocation3 + $0x1], 1 }
 0x238   :  { %893 = vsyncpa [#allocation6], 1 }
 0x239   :  { %894 = vsyncpa [#allocation4], 1 }
 0x23a   :  { %896 = vsyncpa [#allocation4 + $0x1], 1 }

</bundles_post_ra>
